<compile_context>
chip_gen: v7x
topology: tpu7x:2x2x1
jax: 0.10.0
libtpu: 0.0.40
codegen_flags: <defaults>
</compile_context>

<pallas_src>
import jax
import jax.numpy as jnp
from jax.experimental import pallas as pl
from jax.experimental.pallas import tpu as pltpu


def _round_up(x, m):
    return ((x + m - 1) // m) * m


def _tpu_info_attr(names, default):
    try:
        info = pltpu.get_tpu_info()
    except Exception:
        return default
    for n in names:
        v = getattr(info, n, None)
        try:
            v = int(v)
        except (TypeError, ValueError):
            continue
        if v > 0:
            return v
    return default


def _tpu_vmem_bytes():
    # Physical per-TensorCore VMEM.  Conservative fallback = v7x's 64 MiB.
    return _tpu_info_attr(("vmem_capacity_bytes", "vmem_bytes"),
                          64 * 1024 * 1024)


def _num_tensorcores():
    # 1 on v5e/v6e, 2 on v7x.  Capped at 2; fallback 1 (safe everywhere).
    return min(2, _tpu_info_attr(
        ("num_cores", "num_tensorcores", "tensor_cores_per_chip",
         "cores_per_chip"), 1))


def _pick_h_block(h_pad, n_blocks):
    """One H block per TensorCore (never more), each a multiple of 128."""
    n = max(1, min(n_blocks, h_pad // 128))
    while n > 1 and (h_pad % n != 0 or (h_pad // n) % 128 != 0):
        n -= 1
    return h_pad // n


def _indrnn_block_kernel(x_ref, w_ref, b_ref, u_ref, y_ref, hx_ref):
    """One (hidden-block, time-block) grid step of an IndRNN layer.

    x_ref : (T_blk*B, F)      flattened input rows for this time block
    w_ref : (F, H_blk)        1x1-conv weight slice (already transposed)
    b_ref : (1, H_blk)        bias slice (f32)
    u_ref : (1, H_blk)        recurrent (elementwise) weight slice (f32)
    y_ref : (T_blk*B, H_blk)  output block (doubles as the `lin` stash)
    hx_ref: (B, H_blk)        f32 VMEM scratch, persists across the time axis
    """
    t_idx = pl.program_id(1)

    @pl.when(t_idx == 0)
    def _():
        # hidden=None in the module -> zero initial state (self.h0 buffer).
        hx_ref[...] = jnp.zeros_like(hx_ref)

    bsz, h_blk = hx_ref.shape
    t_blk = y_ref.shape[0] // bsz

    # Hoisted, time-invariant input projection: one MXU GEMM per block.
    lin = jnp.dot(x_ref[...], w_ref[...], preferred_element_type=jnp.float32)
    # Stash lin (+ bias) in the output block; the scan overwrites it in place.
    y_ref[...] = (lin + b_ref[...]).astype(y_ref.dtype)

    # Hoist the (1,H)->(B,H) broadcast out of the scan (no in-loop CSE).
    u_b = jnp.broadcast_to(u_ref[...], (bsz, h_blk)).astype(jnp.float32)

    def step(t, hx):
        r0 = pl.multiple_of(t * bsz, 8)            # bsz is a multiple of 8
        slab = y_ref[pl.ds(r0, bsz), :]
        h_new = jnp.clip(slab.astype(jnp.float32) + u_b * hx, 0.0, 6.0)  # relu6
        y_ref[pl.ds(r0, bsz), :] = h_new.astype(y_ref.dtype)
        return h_new

    # TODO(synk): sweep unroll in 4..16 per generation (vreg-spill watch).
    hx_ref[...] = jax.lax.fori_loop(0, t_blk, step, hx_ref[...],
                                    unroll=min(8, t_blk))


def indrnn_layer(x, w_t, b, u, *, max_time_block=None):
    """One IndRNN layer.

    x   : (S, B, F)        activations (F = x_size for layer 0, H_pad after)
    w_t : (F, H_pad)       transposed, zero-padded weight
    b, u: (1, H_pad)       zero-padded bias / recurrent weight (f32)
    returns (S, B, H_pad) in x.dtype.
    """
    seq, batch, feat = x.shape
    h_pad = w_t.shape[1]
    out_dtype = x.dtype

    bsz_pad = _round_up(batch, 8)            # sublane-dense per-step slabs
    n_tc = _num_tensorcores()
    phys = _tpu_vmem_bytes()
    block_budget = int(phys * 0.30)          # bytes allowed for live blocks
    vmem_limit = min(int(phys * 0.75), 112 * 1024 * 1024)

    x_bytes = jnp.dtype(x.dtype).itemsize
    y_bytes = jnp.dtype(out_dtype).itemsize
    w_bytes = jnp.dtype(w_t.dtype).itemsize

    # --- hidden block: one per TensorCore, shrunk only if VMEM demands it ---
    h_blk = _pick_h_block(h_pad, n_tc)

    def _per_t(hb):      # bytes per timestep of double-buffered blocks + temp
        return bsz_pad * (feat * x_bytes * 2 + hb * (y_bytes * 2 + 4))

    def _fixed(hb):      # weights (double-buffered), b/u, hx scratch
        return feat * hb * w_bytes * 2 + hb * 16 + bsz_pad * hb * 4

    while h_blk > 128 and _fixed(h_blk) + 8 * _per_t(h_blk) > block_budget:
        nh = h_blk // 2
        if nh % 128 != 0 or h_pad % nh != 0:
            break
        h_blk = nh

    # --- time block: largest multiple of 8 that fits the VMEM budget -------
    cand = max(8, (block_budget - _fixed(h_blk)) // max(_per_t(h_blk), 1))
    t_blk = int(min(512, _round_up(seq, 8), cand))
    if max_time_block is not None:
        t_blk = min(t_blk, max(8, int(max_time_block)))
    t_blk = max(8, (t_blk // 8) * 8)

    seq_pad = _round_up(seq, t_blk)

    # Zero-pad batch (independent rows) and time (forward recurrence: padded
    # trailing steps can never affect real outputs); both are sliced off.
    if bsz_pad != batch:
        x = jnp.pad(x, ((0, 0), (0, bsz_pad - batch), (0, 0)))
    if seq_pad != seq:
        x = jnp.pad(x, ((0, seq_pad - seq), (0, 0), (0, 0)))
    x2 = x.reshape(seq_pad * bsz_pad, feat)   # row-major view, free

    rows_blk = t_blk * bsz_pad
    grid = (h_pad // h_blk, seq_pad // t_blk)

    y2 = pl.pallas_call(
        _indrnn_block_kernel,
        out_shape=jax.ShapeDtypeStruct((seq_pad * bsz_pad, h_pad), out_dtype),
        grid_spec=pltpu.PrefetchScalarGridSpec(
            num_scalar_prefetch=0,
            grid=grid,
            in_specs=[
                pl.BlockSpec((rows_blk, feat), lambda h, t: (t, 0)),
                pl.BlockSpec((feat, h_blk), lambda h, t: (0, h)),
                pl.BlockSpec((1, h_blk), lambda h, t: (0, h)),
                pl.BlockSpec((1, h_blk), lambda h, t: (0, h)),
            ],
            out_specs=pl.BlockSpec((rows_blk, h_blk), lambda h, t: (t, h)),
            scratch_shapes=[pltpu.VMEM((bsz_pad, h_blk), jnp.float32)],
        ),
        compiler_params=pltpu.CompilerParams(
            # Hidden blocks are independent -> shard across TensorCores on
            # v7x; the time axis carries the recurrence -> sequential.
            dimension_semantics=("parallel", "arbitrary"),
            vmem_limit_bytes=int(vmem_limit),
        ),
    )(x2, w_t, b, u)

    y = y2.reshape(seq_pad, bsz_pad, h_pad)
    return y[:seq, :batch]


def indrnn_forward(x, weights, biases, recurrents, matmul_dtype=None,
                   max_time_block=None):
    """Reproduce IndRNN.forward with hidden=None (batch_first=False).

    x: (seq, batch, x_size) float32
    matmul_dtype: optionally jnp.bfloat16 on v6e/v7x for the GEMM inputs and
                  inter-layer activations (recurrence state stays f32).
    returns (output, h_n):
      output: (seq, batch, hidden)     [torch's .squeeze(2) is a no-op, H>1]
      h_n   : (n_layer, batch, hidden)
    """
    seq, batch, _ = x.shape
    n_layer = len(weights)
    hidden = weights[0].shape[0]
    h_pad = _round_up(hidden, 128)           # lane-dense hidden dim

    act = x.astype(jnp.float32)              # (S, B, F); F = x_size for layer 0
    finals = []
    for i in range(n_layer):
        w = weights[i].astype(jnp.float32)   # (hidden, in_size); 1x1 Conv1d == matmul
        in_size = w.shape[1]
        in_dim = act.shape[-1]               # x_size (layer 0) or h_pad (deeper)
        w_pad = jnp.zeros((h_pad, in_dim), jnp.float32).at[:hidden, :in_size].set(w)
        w_t = w_pad.T                        # (in_dim, h_pad)
        b = jnp.zeros((1, h_pad), jnp.float32).at[:, :hidden].set(
            biases[i].reshape(1, hidden).astype(jnp.float32))
        u = jnp.zeros((1, h_pad), jnp.float32).at[:, :hidden].set(
            recurrents[i].reshape(1, hidden).astype(jnp.float32))

        x_in = act
        if matmul_dtype is not None:
            x_in = x_in.astype(matmul_dtype)
            w_t = w_t.astype(matmul_dtype)
        act = indrnn_layer(x_in, w_t, b, u, max_time_block=max_time_block)
        finals.append(act[-1, :, :hidden].astype(jnp.float32))  # final hx

    out = act[:, :, :hidden].astype(jnp.float32)
    # Mirrors torch: cat(finals, -1).view(L, B, H) — a raw reinterpret that
    # interleaves layer/batch exactly like the PyTorch module's .view() does.
    hiddens = jnp.concatenate(finals, axis=-1).reshape(n_layer, batch, hidden)
    return out, hiddens


def indrnn_reference(x, weights, biases, recurrents):
    """Pure-JAX reference mirroring the PyTorch loop, for correctness check."""
    seq, batch, _ = x.shape
    n_layer = len(weights)
    hidden = weights[0].shape[0]
    h = x
    finals = []
    for i in range(n_layer):
        hx = jnp.zeros((batch, hidden), jnp.float32)
        lin = jnp.einsum('sbf,hf->sbh', h, weights[i]) + biases[i]
        outs = []
        for t in range(seq):
            hx = jnp.clip(lin[t] + recurrents[i] * hx, 0.0, 6.0)
            outs.append(hx)
        h = jnp.stack(outs, 0)
        finals.append(hx)
    return h, jnp.concatenate(finals, -1).reshape(n_layer, batch, hidden)


if __name__ == "__main__":
    # Small shapes consistent with the module: x (seq, batch, x_size).
    # seq=12 with max_time_block=8 exercises time-block padding (pad to 16)
    # and hidden-state carry across two time blocks; batch=2 exercises the
    # batch sublane padding and hidden=32 the lane padding to 128.
    x_size, hidden_size, n_layer = 4, 32, 2
    seq_len, batch = 12, 2

    key = jax.random.PRNGKey(0)
    keys = jax.random.split(key, 2 * n_layer + 1)

    weights, biases, recurrents = [], [], []
    for i in range(n_layer):
        in_size = x_size if i == 0 else hidden_size
        # torch.nn.init.normal_(weight, 0, 0.01); bias = 0; recurrent ~ U[0,1)
        w = 0.01 * jax.random.normal(keys[2 * i], (hidden_size, in_size),
                                     jnp.float32)
        b = jnp.zeros((hidden_size,), jnp.float32)
        u = jax.random.uniform(keys[2 * i + 1], (hidden_size,), jnp.float32)
        weights.append(w)
        biases.append(b)
        recurrents.append(u)

    x = jax.random.normal(keys[-1], (seq_len, batch, x_size), jnp.float32)

    # f32 GEMM here so the 1e-5 check against the f32 reference holds; pass
    # matmul_dtype=jnp.bfloat16 on v6e/v7x for the fast path.
    out, h_n = indrnn_forward(x, weights, biases, recurrents,
                              max_time_block=8)
    out = jax.block_until_ready(out)
    h_n = jax.block_until_ready(h_n)

    ref_out, ref_hn = indrnn_reference(x, weights, biases, recurrents)
    assert out.shape == (seq_len, batch, hidden_size)
    assert h_n.shape == (n_layer, batch, hidden_size)
    assert jnp.allclose(out, ref_out, atol=1e-5), "output mismatch"
    assert jnp.allclose(h_n, ref_hn, atol=1e-5), "hidden mismatch"

    print("KERNEL_OK")
</pallas_src>

<mosaic_0001>
module attributes {stable_mosaic.version = 11 : i64} {
  func.func @_indrnn_block_kernel(%arg0: i32, %arg1: i32, %arg2: memref<64x4xf32, #tpu.memory_space<vmem>>, %arg3: memref<4x128xf32, #tpu.memory_space<vmem>>, %arg4: memref<1x128xf32, #tpu.memory_space<vmem>>, %arg5: memref<1x128xf32, #tpu.memory_space<vmem>>, %arg6: memref<64x128xf32, #tpu.memory_space<vmem>>, %arg7: memref<8x128xf32, #tpu.memory_space<vmem>>) attributes {dimension_semantics = [#tpu.dimension_semantics<parallel>, #tpu.dimension_semantics<arbitrary>], iteration_bounds = array<i64: 1, 2>, scalar_prefetch = 0 : i64, scratch_operands = 1 : i64, tpu.core_type = #tpu.core_type<tc>, window_params = [{transform_indices = @transform_0, window_bounds = array<i64: 64, 4>}, {transform_indices = @transform_1, window_bounds = array<i64: 4, 128>}, {transform_indices = @transform_2, window_bounds = array<i64: 1, 128>}, {transform_indices = @transform_3, window_bounds = array<i64: 1, 128>}, {transform_indices = @transform_4, window_bounds = array<i64: 64, 128>}]} {
    %c0_i32 = arith.constant 0 : i32
    %0 = arith.cmpi eq, %arg1, %c0_i32 : i32
    %1 = arith.extui %0 : i1 to i32
    %c0_i32_0 = arith.constant 0 : i32
    %2 = arith.cmpi ne, %1, %c0_i32_0 : i32
    scf.if %2 {
      %cst_55 = arith.constant 0.000000e+00 : f32
      %111 = vector.broadcast %cst_55 : f32 to vector<8x128xf32>
      %c0_56 = arith.constant 0 : index
      %c0_57 = arith.constant 0 : index
      %112 = vector.load %arg7[%c0_56, %c0_57] : memref<8x128xf32, #tpu.memory_space<vmem>>, vector<8x128xf32>
      tpu.vector_store %arg7[%c0_56, %c0_57], %111 {strides = array<i32>} : memref<8x128xf32, #tpu.memory_space<vmem>>, vector<8x128xf32>,
    } else {
    }
    %c0 = arith.constant 0 : index
    %c0_1 = arith.constant 0 : index
    %3 = vector.load %arg2[%c0, %c0_1] : memref<64x4xf32, #tpu.memory_space<vmem>>, vector<64x4xf32>
    %c0_2 = arith.constant 0 : index
    %c0_3 = arith.constant 0 : index
    %4 = vector.load %arg3[%c0_2, %c0_3] : memref<4x128xf32, #tpu.memory_space<vmem>>, vector<4x128xf32>
    %cst = arith.constant dense<0.000000e+00> : vector<64x128xf32>
    %5 = tpu.matmul %3, %4, %cst {dimension_numbers = #tpu.dot_dimension_numbers<[1], [0], [0], [1], [0, 0, 1, 1], [], []>} : vector<64x4xf32>, vector<4x128xf32>, vector<64x128xf32> -> vector<64x128xf32>
    %c0_4 = arith.constant 0 : index
    %c0_5 = arith.constant 0 : index
    %6 = vector.load %arg4[%c0_4, %c0_5] : memref<1x128xf32, #tpu.memory_space<vmem>>, vector<1x128xf32>
    %7 = vector.broadcast %6 : vector<1x128xf32> to vector<64x128xf32>
    %8 = arith.addf %5, %7 : vector<64x128xf32>
    %c0_6 = arith.constant 0 : index
    %c0_7 = arith.constant 0 : index
    %9 = vector.load %arg6[%c0_6, %c0_7] : memref<64x128xf32, #tpu.memory_space<vmem>>, vector<64x128xf32>
    tpu.vector_store %arg6[%c0_6, %c0_7], %8 {strides = array<i32>} : memref<64x128xf32, #tpu.memory_space<vmem>>, vector<64x128xf32>,
    %c0_8 = arith.constant 0 : index
    %c0_9 = arith.constant 0 : index
    %10 = vector.load %arg5[%c0_8, %c0_9] : memref<1x128xf32, #tpu.memory_space<vmem>>, vector<1x128xf32>
    %11 = vector.shape_cast %10 : vector<1x128xf32> to vector<1x128xf32>
    %12 = vector.broadcast %11 : vector<1x128xf32> to vector<8x128xf32>
    %c0_10 = arith.constant 0 : index
    %c0_11 = arith.constant 0 : index
    %13 = vector.load %arg7[%c0_10, %c0_11] : memref<8x128xf32, #tpu.memory_space<vmem>>, vector<8x128xf32>
    %c0_i32_12 = arith.constant 0 : i32
    %c8_i32 = arith.constant 8 : i32
    %14 = arith.muli %c0_i32_12, %c8_i32 : i32
    %15 = tpu.assume_multiple %14, 8 : i32
    %16 = arith.index_cast %15 : i32 to index
    %c0_13 = arith.constant 0 : index
    %17 = vector.load %arg6[%16, %c0_13] : memref<64x128xf32, #tpu.memory_space<vmem>>, vector<8x128xf32>
    %18 = arith.mulf %12, %13 : vector<8x128xf32>
    %19 = arith.addf %17, %18 : vector<8x128xf32>
    %cst_14 = arith.constant 0.000000e+00 : f32
    %cst_15 = arith.constant 6.000000e+00 : f32
    %20 = vector.broadcast %cst_14 : f32 to vector<8x128xf32>
    %21 = arith.maximumf %20, %19 : vector<8x128xf32>
    %22 = vector.broadcast %cst_15 : f32 to vector<8x128xf32>
    %23 = arith.minimumf %22, %21 : vector<8x128xf32>
    %24 = arith.index_cast %15 : i32 to index
    %c0_16 = arith.constant 0 : index
    %25 = vector.load %arg6[%24, %c0_16] : memref<64x128xf32, #tpu.memory_space<vmem>>, vector<8x128xf32>
    tpu.vector_store %arg6[%24, %c0_16], %23 {strides = array<i32>} : memref<64x128xf32, #tpu.memory_space<vmem>>, vector<8x128xf32>,
    %c1_i32 = arith.constant 1 : i32
    %c8_i32_17 = arith.constant 8 : i32
    %26 = arith.muli %c1_i32, %c8_i32_17 : i32
    %27 = tpu.assume_multiple %26, 8 : i32
    %28 = arith.index_cast %27 : i32 to index
    %c0_18 = arith.constant 0 : index
    %29 = vector.load %arg6[%28, %c0_18] : memref<64x128xf32, #tpu.memory_space<vmem>>, vector<8x128xf32>
    %30 = arith.mulf %12, %23 : vector<8x128xf32>
    %31 = arith.addf %29, %30 : vector<8x128xf32>
    %cst_19 = arith.constant 0.000000e+00 : f32
    %cst_20 = arith.constant 6.000000e+00 : f32
    %32 = vector.broadcast %cst_19 : f32 to vector<8x128xf32>
    %33 = arith.maximumf %32, %31 : vector<8x128xf32>
    %34 = vector.broadcast %cst_20 : f32 to vector<8x128xf32>
    %35 = arith.minimumf %34, %33 : vector<8x128xf32>
    %36 = arith.index_cast %27 : i32 to index
    %c0_21 = arith.constant 0 : index
    %37 = vector.load %arg6[%36, %c0_21] : memref<64x128xf32, #tpu.memory_space<vmem>>, vector<8x128xf32>
    tpu.vector_store %arg6[%36, %c0_21], %35 {strides = array<i32>} : memref<64x128xf32, #tpu.memory_space<vmem>>, vector<8x128xf32>,
    %c2_i32 = arith.constant 2 : i32
    %c8_i32_22 = arith.constant 8 : i32
    %38 = arith.muli %c2_i32, %c8_i32_22 : i32
    %39 = tpu.assume_multiple %38, 8 : i32
    %40 = arith.index_cast %39 : i32 to index
    %c0_23 = arith.constant 0 : index
    %41 = vector.load %arg6[%40, %c0_23] : memref<64x128xf32, #tpu.memory_space<vmem>>, vector<8x128xf32>
    %42 = arith.mulf %12, %35 : vector<8x128xf32>
    %43 = arith.addf %41, %42 : vector<8x128xf32>
    %cst_24 = arith.constant 0.000000e+00 : f32
    %cst_25 = arith.constant 6.000000e+00 : f32
    %44 = vector.broadcast %cst_24 : f32 to vector<8x128xf32>
    %45 = arith.maximumf %44, %43 : vector<8x128xf32>
    %46 = vector.broadcast %cst_25 : f32 to vector<8x128xf32>
    %47 = arith.minimumf %46, %45 : vector<8x128xf32>
    %48 = arith.index_cast %39 : i32 to index
    %c0_26 = arith.constant 0 : index
    %49 = vector.load %arg6[%48, %c0_26] : memref<64x128xf32, #tpu.memory_space<vmem>>, vector<8x128xf32>
    tpu.vector_store %arg6[%48, %c0_26], %47 {strides = array<i32>} : memref<64x128xf32, #tpu.memory_space<vmem>>, vector<8x128xf32>,
    %c3_i32 = arith.constant 3 : i32
    %c8_i32_27 = arith.constant 8 : i32
    %50 = arith.muli %c3_i32, %c8_i32_27 : i32
    %51 = tpu.assume_multiple %50, 8 : i32
    %52 = arith.index_cast %51 : i32 to index
    %c0_28 = arith.constant 0 : index
    %53 = vector.load %arg6[%52, %c0_28] : memref<64x128xf32, #tpu.memory_space<vmem>>, vector<8x128xf32>
    %54 = arith.mulf %12, %47 : vector<8x128xf32>
    %55 = arith.addf %53, %54 : vector<8x128xf32>
    %cst_29 = arith.constant 0.000000e+00 : f32
    %cst_30 = arith.constant 6.000000e+00 : f32
    %56 = vector.broadcast %cst_29 : f32 to vector<8x128xf32>
    %57 = arith.maximumf %56, %55 : vector<8x128xf32>
    %58 = vector.broadcast %cst_30 : f32 to vector<8x128xf32>
    %59 = arith.minimumf %58, %57 : vector<8x128xf32>
    %60 = arith.index_cast %51 : i32 to index
    %c0_31 = arith.constant 0 : index
    %61 = vector.load %arg6[%60, %c0_31] : memref<64x128xf32, #tpu.memory_space<vmem>>, vector<8x128xf32>
    tpu.vector_store %arg6[%60, %c0_31], %59 {strides = array<i32>} : memref<64x128xf32, #tpu.memory_space<vmem>>, vector<8x128xf32>,
    %c4_i32 = arith.constant 4 : i32
    %c8_i32_32 = arith.constant 8 : i32
    %62 = arith.muli %c4_i32, %c8_i32_32 : i32
    %63 = tpu.assume_multiple %62, 8 : i32
    %64 = arith.index_cast %63 : i32 to index
    %c0_33 = arith.constant 0 : index
    %65 = vector.load %arg6[%64, %c0_33] : memref<64x128xf32, #tpu.memory_space<vmem>>, vector<8x128xf32>
    %66 = arith.mulf %12, %59 : vector<8x128xf32>
    %67 = arith.addf %65, %66 : vector<8x128xf32>
    %cst_34 = arith.constant 0.000000e+00 : f32
    %cst_35 = arith.constant 6.000000e+00 : f32
    %68 = vector.broadcast %cst_34 : f32 to vector<8x128xf32>
    %69 = arith.maximumf %68, %67 : vector<8x128xf32>
    %70 = vector.broadcast %cst_35 : f32 to vector<8x128xf32>
    %71 = arith.minimumf %70, %69 : vector<8x128xf32>
    %72 = arith.index_cast %63 : i32 to index
    %c0_36 = arith.constant 0 : index
    %73 = vector.load %arg6[%72, %c0_36] : memref<64x128xf32, #tpu.memory_space<vmem>>, vector<8x128xf32>
    tpu.vector_store %arg6[%72, %c0_36], %71 {strides = array<i32>} : memref<64x128xf32, #tpu.memory_space<vmem>>, vector<8x128xf32>,
    %c5_i32 = arith.constant 5 : i32
    %c8_i32_37 = arith.constant 8 : i32
    %74 = arith.muli %c5_i32, %c8_i32_37 : i32
    %75 = tpu.assume_multiple %74, 8 : i32
    %76 = arith.index_cast %75 : i32 to index
    %c0_38 = arith.constant 0 : index
    %77 = vector.load %arg6[%76, %c0_38] : memref<64x128xf32, #tpu.memory_space<vmem>>, vector<8x128xf32>
    %78 = arith.mulf %12, %71 : vector<8x128xf32>
    %79 = arith.addf %77, %78 : vector<8x128xf32>
    %cst_39 = arith.constant 0.000000e+00 : f32
    %cst_40 = arith.constant 6.000000e+00 : f32
    %80 = vector.broadcast %cst_39 : f32 to vector<8x128xf32>
    %81 = arith.maximumf %80, %79 : vector<8x128xf32>
    %82 = vector.broadcast %cst_40 : f32 to vector<8x128xf32>
    %83 = arith.minimumf %82, %81 : vector<8x128xf32>
    %84 = arith.index_cast %75 : i32 to index
    %c0_41 = arith.constant 0 : index
    %85 = vector.load %arg6[%84, %c0_41] : memref<64x128xf32, #tpu.memory_space<vmem>>, vector<8x128xf32>
    tpu.vector_store %arg6[%84, %c0_41], %83 {strides = array<i32>} : memref<64x128xf32, #tpu.memory_space<vmem>>, vector<8x128xf32>,
    %c6_i32 = arith.constant 6 : i32
    %c8_i32_42 = arith.constant 8 : i32
    %86 = arith.muli %c6_i32, %c8_i32_42 : i32
    %87 = tpu.assume_multiple %86, 8 : i32
    %88 = arith.index_cast %87 : i32 to index
    %c0_43 = arith.constant 0 : index
    %89 = vector.load %arg6[%88, %c0_43] : memref<64x128xf32, #tpu.memory_space<vmem>>, vector<8x128xf32>
    %90 = arith.mulf %12, %83 : vector<8x128xf32>
    %91 = arith.addf %89, %90 : vector<8x128xf32>
    %cst_44 = arith.constant 0.000000e+00 : f32
    %cst_45 = arith.constant 6.000000e+00 : f32
    %92 = vector.broadcast %cst_44 : f32 to vector<8x128xf32>
    %93 = arith.maximumf %92, %91 : vector<8x128xf32>
    %94 = vector.broadcast %cst_45 : f32 to vector<8x128xf32>
    %95 = arith.minimumf %94, %93 : vector<8x128xf32>
    %96 = arith.index_cast %87 : i32 to index
    %c0_46 = arith.constant 0 : index
    %97 = vector.load %arg6[%96, %c0_46] : memref<64x128xf32, #tpu.memory_space<vmem>>, vector<8x128xf32>
    tpu.vector_store %arg6[%96, %c0_46], %95 {strides = array<i32>} : memref<64x128xf32, #tpu.memory_space<vmem>>, vector<8x128xf32>,
    %c7_i32 = arith.constant 7 : i32
    %c8_i32_47 = arith.constant 8 : i32
    %98 = arith.muli %c7_i32, %c8_i32_47 : i32
    %99 = tpu.assume_multiple %98, 8 : i32
    %100 = arith.index_cast %99 : i32 to index
    %c0_48 = arith.constant 0 : index
    %101 = vector.load %arg6[%100, %c0_48] : memref<64x128xf32, #tpu.memory_space<vmem>>, vector<8x128xf32>
    %102 = arith.mulf %12, %95 : vector<8x128xf32>
    %103 = arith.addf %101, %102 : vector<8x128xf32>
    %cst_49 = arith.constant 0.000000e+00 : f32
    %cst_50 = arith.constant 6.000000e+00 : f32
    %104 = vector.broadcast %cst_49 : f32 to vector<8x128xf32>
    %105 = arith.maximumf %104, %103 : vector<8x128xf32>
    %106 = vector.broadcast %cst_50 : f32 to vector<8x128xf32>
    %107 = arith.minimumf %106, %105 : vector<8x128xf32>
    %108 = arith.index_cast %99 : i32 to index
    %c0_51 = arith.constant 0 : index
    %109 = vector.load %arg6[%108, %c0_51] : memref<64x128xf32, #tpu.memory_space<vmem>>, vector<8x128xf32>
    tpu.vector_store %arg6[%108, %c0_51], %107 {strides = array<i32>} : memref<64x128xf32, #tpu.memory_space<vmem>>, vector<8x128xf32>,
    %c8_i32_52 = arith.constant 8 : i32
    %c0_53 = arith.constant 0 : index
    %c0_54 = arith.constant 0 : index
    %110 = vector.load %arg7[%c0_53, %c0_54] : memref<8x128xf32, #tpu.memory_space<vmem>>, vector<8x128xf32>
    tpu.vector_store %arg7[%c0_53, %c0_54], %107 {strides = array<i32>} : memref<8x128xf32, #tpu.memory_space<vmem>>, vector<8x128xf32>,
    return
  }
  func.func @transform_0(%arg0: i32, %arg1: i32) -> (i32, i32) {
    %c0_i32 = arith.constant 0 : i32
    %c0_i32_0 = arith.constant 0 : i32
    return %arg1, %c0_i32 : i32, i32
  }
  func.func @transform_1(%arg0: i32, %arg1: i32) -> (i32, i32) {
    %c0_i32 = arith.constant 0 : i32
    %c0_i32_0 = arith.constant 0 : i32
    return %c0_i32, %arg0 : i32, i32
  }
  func.func @transform_2(%arg0: i32, %arg1: i32) -> (i32, i32) {
    %c0_i32 = arith.constant 0 : i32
    %c0_i32_0 = arith.constant 0 : i32
    return %c0_i32, %arg0 : i32, i32
  }
  func.func @transform_3(%arg0: i32, %arg1: i32) -> (i32, i32) {
    %c0_i32 = arith.constant 0 : i32
    %c0_i32_0 = arith.constant 0 : i32
    return %c0_i32, %arg0 : i32, i32
  }
  func.func @transform_4(%arg0: i32, %arg1: i32) -> (i32, i32) {
    %c0_i32 = arith.constant 0 : i32
    return %arg1, %arg0 : i32, i32
  }
}

</mosaic_0001>

<bundles_post_ra>
// kernel: tpu_custom_call.1
= control target key start
LH: loop header
LB: loop body
LE: loop exit
PB: predicated region body
PF: predicated region fallthrough
CT: control target
= control target key end

     0   :  { %9 = vsyncpa [#allocation4], 0  ;;  %s993_s0 = inlined_call_operand.vmem [shape: f32[128,4], index: 0, kind: input, shape index: {}]   ;;  %s994_s1 = inlined_call_operand.vmem [shape: f32[4,128], index: 1, kind: input, shape index: {}]   ;;  %s995_s2 = inlined_call_operand.vmem [shape: f32[1,128], index: 2, kind: input, shape index: {}]   ;;  %s996_s3 = inlined_call_operand.vmem [shape: f32[1,128], index: 3, kind: input, shape index: {}]   ;;  %s997_s4 = inlined_call_operand.hbm [shape: f32[128,128], index: 4, kind: output, shape index: {}]  }
   0x1   :  { %11 = vsyncpa [#allocation4 + $0x1], 0  ;;  %s846_s15 = smov 0   ;;  %s848_s16 = smov 0  }
   0x2   :  { %s850_s17 = smov 0   ;;  %s852_s18 = smov 0  }
   0x3   :  { %s854_s19 = smov 0   ;;  %s856_s20 = smov 0  }
   0x4 LB: > { %s611_s21 = sadd.s32 4294967295, %s815_s20   ;;  %s612_s22 = sadd.s32 4294967294, %s815_s20   ;;  %s815_s20 = sphi %s856_s20, %s17_s20   ;;  %s811_s19 = sphi %s854_s19, %s1004_s19   ;;  %s807_s18 = sphi %s852_s18, %s1003_s18   ;;  %s803_s17 = sphi %s850_s17, %s1002_s17   ;;  %s799_s16 = sphi %s848_s16, %s1001_s16   ;;  %s795_s15 = sphi %s846_s15, %s1000_s15  }
   0x5   : > { %s26_s23 = sadd.s32 1, %s811_s19  ;;  %s142_s24 = sadd.s32 1, %s803_s17 }
   0x6   : > { %p27_p0 = scmp.ge.s32.totalorder %s26_s23, 2  ;;  %p152_p1 = scmp.ne.s32.totalorder %s803_s17, %s799_s16 }
   0x7   : > { %p153_p2 = scmp.eq.s32.totalorder %s611_s21, 1  ;;  %p158_p3 = scmp.ne.s32.totalorder %s799_s16, %s795_s15 }
   0x8   : > { %s1006_s23 = smov (%p27_p0, %s26_s23), 0  ;;  %p159_p5 = scmp.eq.s32.totalorder %s612_s22, 1 }
   0x9   : > { %p886_p4 = por %p153_p2, %p152_p1  ;;  %s137_s26 = ssub.s32 %s811_s19, %s1006_s23 }
   0xa   : > { %p618_p6 = scmp.ge.s32.totalorder %s815_s20, 1  ;;  %p140_p7 = scmp.eq.s32.totalorder %s137_s26, 0 }
   0xb   : > { %p893_p8 = por %p159_p5, %p158_p3  ;;  %p205_p9 = scmp.lt.s32.totalorder %s815_s20, 3 }
   0xc   : > { %s899_s28 = scalar_select %p140_p7, %s803_s17, %s142_s24  }
   0xd   : > { %p206_p10 = pnand %p618_p6, %p205_p9 }
   0xe   : > { %s238_s29 = sand.u32 (!%p206_p10), 1, %s799_s16   ;;  %s620_s30 = sshll.u32 (!%p206_p10), %s807_s18, 3 }
   0xf   : > { %209 = sbr.rel (%p206_p10) target bundleno = 324 (0x144), region = 36  ;;  %s619_s5 = sshll.u32 (!%p206_p10), %s238_s29, 6 }
  0x10   : > { %p242_p11 = scmp.lt.s32.totalorder (!%p206_p10), %s620_s30, 15  ;;  %s908_s10 = scalar_lea.vmem (!%p206_p10), [#allocation3], %s619_s5 }
  0x11   : > { %p622_p12 = scmp.ne.s32.totalorder (!%p206_p10), %s807_s18, 0 }
  0x16   : > { %s1008_s30 = smov (!%p242_p11, %s620_s30), 15  ;;  %261 = sbr.rel (%p622_p12) target bundleno = 29 (0x1d), region = 40 }
  0x17   : > { %s621_s6 = sshll.u32 %s1008_s30, 3  ;;  %v817_v0 = vmov (!%p622_p12), 0.0  }
  0x18   : > { %s245_s9 = scalar_lea.vmem %s993_s0, %s621_s6  ;;  %262 = vst [vmem:[#allocation2] sm:$0xff] (!%p622_p12), %v817_v0 }
  0x1d PF: > { %v271_v1 = vld [vmem:[%s994_s1] sm:$0xf]  ;;  %vm304_vm0 = vcmask 1043456   ;;  %vm279_vm1 = vcmask 31744   ;;  %v264_v3 = vld [vmem:[%s245_s9 + $0x8] sm:$0xff]  ;;  %v265_v4 = vld [vmem:[%s245_s9 + $0x10] sm:$0xff] }
  0x1e   : > { %v263_v2 = vld [vmem:[%s245_s9] sm:$0xff]  ;;  %663 = vmatprep.subr.msk.mxu0 %vm304_vm0, %v271_v1  ;;  %677 = vmatprep.subr.msk.mxu1 %vm304_vm0, %v271_v1  ;;  %v268_v6 = vld [vmem:[%s245_s9 + $0x28] sm:$0xff]  ;;  %v269_v7 = vld [vmem:[%s245_s9 + $0x30] sm:$0xff]  ;;  %s653_s24 = sshll.u32 %s807_s18, 10  ;;  %s500_s26 = sshll.u32 %s908_s10, 4  ;;  %s942_s26 = int_to_ptr.vmem [resolvable:$true] %s500_s26 }
  0x1f   : > { %665 = vmatprep.mubr.msk.f32.mxu0 %vm279_vm1, %v263_v2  ;;  %v267_v5 = vld [vmem:[%s245_s9 + $0x20] sm:$0xff]  ;;  %664 = vmatpush3.msk.msra.mxu0 %vm304_vm0, %v271_v1  ;;  %v266_v8 = vld [vmem:[%s245_s9 + $0x18] sm:$0xff]  ;;  %v428_v11 = vld [vmem:[#allocation2] sm:$0xff]  ;;  %s940_s6 = scalar_lea.hbm %s997_s4, %s653_s24  ;;  %s947_s7 = scalar_lea.sflag [#allocation4], %s238_s29 }
  0x20   : > { %666 = vmatmul.mubr.msk.f32.vlgmr.msra.gmra.mrb[0].mxu0 %vm279_vm1, %v264_v3  ;;  %678 = vmatpush3.msk.msra.mxu1 %vm304_vm0, %v271_v1  ;;  %v270_v9 = vld [vmem:[%s245_s9 + $0x38] sm:$0xff]  ;;  %v633_v10 = vld [vmem:[%s996_s3] ss:$0 sm:$0xff]  ;;  %s737_s8 = scalar_lea.vmem %s942_s26, 1024  ;;  %s818_s18 = smov [#allocation3]  }
  0x21   : > { %668 = vmatprep.mubr.msk.f32.mxu0 %vm279_vm1, %v265_v4  ;;  %671 = vmatprep.mubr.msk.f32.mxu1 %vm279_vm1, %v267_v5  ;;  %v623_v12 = vld [vmem:[%s995_s2] ss:$0 sm:$0xff]  ;;  %v430_v14 = vmul.f32 %v633_v10, %v428_v11  ;;  %p738_p13 = scmp.ne.s32.totalorder %s942_s26, %s737_s8  ;;  %s741_s9 = sshll.u32 %s818_s18, 4  ;;  %s742_s9 = int_to_ptr.vmem [resolvable:$false] %s741_s9 }
  0x22   : > { %672 = vmatmul.mubr.msk.f32.vlgmr.msra.gmra.mrb[0].mxu1 %vm279_vm1, %v268_v6  ;;  %s743_s11 = scalar_lea.vmem %s742_s9, 2048  ;;  %p744_p2 = scmp.lt.s32.totalorder %s942_s26, %s742_s9 }
  0x23   : > { %674 = vmatprep.mubr.msk.f32.mxu1 %vm279_vm1, %v269_v7  ;;  %p739_p0 = pnand %p738_p13, %p886_p4  ;;  %p745_p3 = scmp.lt.s32.totalorder %s743_s11, %s737_s8 }
  0x24   : > { %669 = vmatmul.mubr.msk.f32.gmra.mrb[2].mxu0 %vm279_vm1, %v266_v8 }
  0x25   : > { %p740_p1 = pneg %p739_p0  ;;  %p746_p5 = por %p745_p3, %p744_p2 }
  0x26   : > { %675 = vmatmul.mubr.msk.f32.gmra.mrb[2].mxu1 %vm279_vm1, %v270_v9 }
  0x27   : > { %p747_p6 = pnand %p746_p5, %p740_p1 }
  0xf3   : > { %v667_v13 = vpop.f32.mrb[0].mxu0 }
  0xf4   : > { %v374_v15 = vpop.f32.mrb[1].mxu0  ;;  %v380_v26 = vadd.f32 %v667_v13, %v623_v12 }
  0xf5   : > { %v375_v16 = vadd.f32 %v623_v12, %v374_v15  ;;  %v673_v17 = vpop.f32.mrb[0].mxu1 }
  0xf6   : > { %v394_v18 = vpop.f32.mrb[1].mxu1  ;;  %v400_v46 = vadd.f32 %v673_v17, %v623_v12 }
  0xf7   : > { %v431_v19 = vadd.f32 %v430_v14, %v375_v16  ;;  %v670_v20 = vpop.f32.mrb[2].mxu0  ;;  %v395_v40 = vadd.f32 %v623_v12, %v394_v18 }
  0xf8   : > { %v384_v21 = vpop.f32.mrb[3].mxu0  ;;  %v390_v36 = vadd.f32 %v670_v20, %v623_v12 }
  0xf9   : > { %v432_v22 = vmax.f32 %v431_v19, 0.0  ;;  %v676_v23 = vpop.f32.mrb[2].mxu1  ;;  %v385_v30 = vadd.f32 %v623_v12, %v384_v21 }
  0xfa   : > { %v404_v24 = vpop.f32.mrb[3].mxu1  ;;  %v410_v56 = vadd.f32 %v676_v23, %v623_v12 }
  0xfb   : > { %v433_v25 = vmin.f32 %v432_v22, 6.0  ;;  %v405_v50 = vadd.f32 %v623_v12, %v404_v24 }
  0xfd   : > { %434 = vst [vmem:[%s908_s10] sm:$0xff] %v433_v25  ;;  %v437_v27 = vmul.f32 %v633_v10, %v433_v25 }
  0xff   : > { %v438_v28 = vadd.f32 %v437_v27, %v380_v26 }
 0x101   : > { %v439_v29 = vmax.f32 %v438_v28, 0.0 }
 0x103   : > { %v440_v31 = vmin.f32 %v439_v29, 6.0 }
 0x105   : > { %635 = vst [vmem:[%s908_s10 + $0x8] sm:$0xff] %v440_v31  ;;  %v444_v32 = vmul.f32 %v633_v10, %v440_v31 }
 0x107   : > { %v445_v33 = vadd.f32 %v444_v32, %v385_v30 }
 0x109   : > { %v446_v34 = vmax.f32 %v445_v33, 0.0 }
 0x10b   : > { %v447_v35 = vmin.f32 %v446_v34, 6.0 }
 0x10d   : > { %637 = vst [vmem:[%s908_s10 + $0x10] sm:$0xff] %v447_v35  ;;  %v451_v37 = vmul.f32 %v633_v10, %v447_v35 }
 0x10f   : > { %v452_v38 = vadd.f32 %v451_v37, %v390_v36 }
 0x111   : > { %v453_v39 = vmax.f32 %v452_v38, 0.0 }
 0x113   : > { %v454_v41 = vmin.f32 %v453_v39, 6.0 }
 0x115   : > { %639 = vst [vmem:[%s908_s10 + $0x18] sm:$0xff] %v454_v41  ;;  %v458_v42 = vmul.f32 %v633_v10, %v454_v41 }
 0x117   : > { %v459_v43 = vadd.f32 %v458_v42, %v395_v40 }
 0x119   : > { %v460_v44 = vmax.f32 %v459_v43, 0.0 }
 0x11b   : > { %v461_v45 = vmin.f32 %v460_v44, 6.0 }
 0x11d   : > { %641 = vst [vmem:[%s908_s10 + $0x20] sm:$0xff] %v461_v45  ;;  %v465_v47 = vmul.f32 %v633_v10, %v461_v45 }
 0x11f   : > { %v466_v48 = vadd.f32 %v465_v47, %v400_v46 }
 0x121   : > { %v467_v49 = vmax.f32 %v466_v48, 0.0 }
 0x123   : > { %v468_v51 = vmin.f32 %v467_v49, 6.0 }
 0x125   : > { %643 = vst [vmem:[%s908_s10 + $0x28] sm:$0xff] %v468_v51  ;;  %v472_v52 = vmul.f32 %v633_v10, %v468_v51 }
 0x127   : > { %v473_v53 = vadd.f32 %v472_v52, %v405_v50 }
 0x129   : > { %v474_v54 = vmax.f32 %v473_v53, 0.0 }
 0x12b   : > { %v475_v55 = vmin.f32 %v474_v54, 6.0 }
 0x12d   : > { %645 = vst [vmem:[%s908_s10 + $0x30] sm:$0xff] %v475_v55  ;;  %v479_v57 = vmul.f32 %v633_v10, %v475_v55 }
 0x12f   : > { %v480_v58 = vadd.f32 %v479_v57, %v410_v56 }
 0x131   : > { %v481_v59 = vmax.f32 %v480_v58, 0.0 }
 0x133   : > { %v482_v60 = vmin.f32 %v481_v59, 6.0 }
 0x135   : > { %647 = vst [vmem:[%s908_s10 + $0x38] sm:$0xff] %v482_v60  ;;  %484 = vst [vmem:[#allocation2] sm:$0xff] %v482_v60 }
 0x136   : > { %750 = shalt.err (!%p747_p6)
}
 0x137   : > { %s751_s29 = scalar_lea.hbm %s940_s6, 1024  ;;  %s755_s13 = scalar_lea.hbm %s997_s4, 2048 }
 0x138   : > { %p752_p7 = scmp.ne.s32.totalorder %s940_s6, %s751_s29  ;;  %p756_p11 = scmp.lt.u32.totalorder %s940_s6, %s997_s4 }
 0x139   : > { %p757_p12 = scmp.lt.u32.totalorder %s755_s13, %s751_s29  ;;  %p759_p0 = scmp.lt.u32.totalorder %s751_s29, %s940_s6 }
 0x13a   : > { %p753_p9 = pnand %p752_p7, %p886_p4 }
 0x13b   : > { %p758_p13 = por %p757_p12, %p756_p11 }
 0x13c   : > { %p754_p10 = pneg %p753_p9 }
 0x13d   : > { %p760_p1 = por %p759_p0, %p758_p13 }
 0x13f   : > { %p761_p2 = pnand %p760_p1, %p754_p10 }
 0x141   : > { %764 = shalt.err (!%p761_p2)
}
 0x142   : > { %s819_s22 = smov 128   ;;  %s820_s24 = smov 8  }
 0x143   : > { %679 = dma.vmem_to_hbm [thread:$0]  (%p886_p4), %s942_s26, 1024, %s940_s6, %s947_s7, %s819_s22, %s819_s22, %s820_s24  }
 0x144 PF: > { %p685_p3 = scmp.ge.s32.totalorder %s815_s20, 2  ;;  %s515_s30 = sand.u32 1, %s795_s15  }
 0x145   : > { %s516_s5 = scalar_lea.sflag [#allocation4], %s515_s30 }
 0x146   : > { %p682_p5 = pnand %p685_p3, %p893_p8 }
 0x148   : > { %790 = dma.done.wait (!%p682_p5), %s516_s5, 1024  }
 0x149   : > { %792 = vsyncadd (!%p682_p5), %s516_s5, 4294966272  ;;  %s17_s20 = sadd.s32 1, %s815_s20   ;;  %s1000_s15 = smov %s799_s16 }
 0x14a   : > { %p14_p6 = scmp.ge.s32.totalorder %s17_s20, 4   ;;  %s1001_s16 = smov %s803_s17 }
 0x14b   : > { %s1002_s17 = smov %s899_s28  ;;  %s1003_s18 = smov %s811_s19 }
 0x14c   : > { %s1004_s19 = smov %s1006_s23  ;;  %16 = sbr.rel (!%p14_p6) target bundleno = 4 (0x4), region = 91 }
 0x153   :  { %521 = vsyncpa [#allocation4], 1 }
 0x154   :  { %523 = vsyncpa [#allocation4 + $0x1], 1 }

</bundles_post_ra>
